<compile_context>
chip_gen: v6e
topology: v6e:2x2x1
jax: 0.10.0
libtpu: 0.0.40
codegen_flags: <defaults>
</compile_context>

<pallas_src>
import functools

import jax
import jax.numpy as jnp
from jax.experimental import pallas as pl
from jax.experimental.pallas import tpu as pltpu

GROWTH = 32
BOTTLENECK = 128  # bn_size * growth


# --------------------------- helpers ----------------------------------------

def _rup(x, m):
    return (x + m - 1) // m * m


def _pick_tk(k):
    """Largest MXU-friendly K tile that divides K exactly."""
    if k % 128 != 0:
        return k                      # single full-K step (block == full dim)
    for cand in (512, 384, 256, 128):
        if k % cand == 0:
            return cand
    return k


def _pick_tn(n):
    # Review: collapse the j axis whenever the whole output row fits (N <= 512)
    # so the A tile is DMA'd once and the store is one lane-dense slab.
    if n <= 512:
        return n
    for cand in (512, 384, 256, 128):
        if n % cand == 0:
            return cand
    return n


def _pick_tm(mp, tm_max=512):
    if mp > tm_max:
        return tm_max
    if mp >= 256:
        # Split once so the "parallel" M axis can shard across 2 TCs (v7x).
        return _rup((mp + 1) // 2, 16)
    return mp


# --------------------------- Pallas kernels ---------------------------------

def _mm_kernel(*refs, pre, pre_relu, post, post_relu):
    """Tiled matmul, f32 accumulator, optional fused BN prologue/epilogue.

    Operand order: a, b, [pre_scale, pre_shift],
                   [post_scale, post_shift] | [post_shift], out, acc_scratch
    """
    a_ref, b_ref = refs[0], refs[1]
    idx = 2
    if pre:
        ps_ref, pb_ref = refs[idx], refs[idx + 1]
        idx += 2
    if post == "affine":
        qs_ref, qb_ref = refs[idx], refs[idx + 1]
        idx += 2
    elif post == "bias":
        qb_ref = refs[idx]
        idx += 1
    o_ref, acc_ref = refs[idx], refs[idx + 1]

    @pl.when(pl.program_id(2) == 0)
    def _():
        acc_ref[...] = jnp.zeros_like(acc_ref)

    a = a_ref[...]
    if pre:
        # folded BatchNorm (+ReLU) on the input channels, in f32 (v5e: no bf16 VPU)
        af = a.astype(jnp.float32) * ps_ref[...] + pb_ref[...]
        if pre_relu:
            af = jnp.maximum(af, 0.0)
        a = af.astype(jnp.bfloat16)

    acc_ref[...] += jnp.dot(a, b_ref[...], preferred_element_type=jnp.float32)

    @pl.when(pl.program_id(2) == pl.num_programs(2) - 1)
    def _():
        y = acc_ref[...]
        if post == "affine":
            y = y * qs_ref[...] + qb_ref[...]
        elif post == "bias":
            y = y + qb_ref[...]
        if post_relu:
            y = jnp.maximum(y, 0.0)
        o_ref[...] = y.astype(o_ref.dtype)


def _dense_layer_kernel(a_ref, w1_ref, s1_ref, b1_ref, s2_ref, b2_ref, w2_ref,
                        o_ref, acc_ref):
    """Fused DenseNet layer: norm1+ReLU prologue -> 1x1 conv (K accumulation)
    -> norm2+ReLU -> wide 9-tap 3x3-conv matmul (128 -> 288).  The 128-channel
    bottleneck stays in the f32 VMEM accumulator (never written to HBM)."""
    k = pl.program_id(1)

    @pl.when(k == 0)
    def _():
        acc_ref[...] = jnp.zeros_like(acc_ref)

    a = a_ref[...].astype(jnp.float32) * s1_ref[...] + b1_ref[...]
    a = jnp.maximum(a, 0.0).astype(jnp.bfloat16)
    acc_ref[...] += jnp.dot(a, w1_ref[...], preferred_element_type=jnp.float32)

    @pl.when(k == pl.num_programs(1) - 1)
    def _():
        y1 = jnp.maximum(acc_ref[...] * s2_ref[...] + b2_ref[...], 0.0)
        o_ref[...] = jnp.dot(y1.astype(jnp.bfloat16), w2_ref[...],
                             preferred_element_type=jnp.float32
                             ).astype(o_ref.dtype)


def _maxpool_reduce_kernel(x_ref, o_ref):
    # x: (9, tm, C) -> max over the window-tap axis.
    o_ref[...] = jnp.max(x_ref[...], axis=0)


def _bn_relu_gap_kernel(x_ref, s_ref, b_ref, o_ref):
    # x: (1, H*W, C) one batch image; norm5 + ReLU + global average pool.
    x = x_ref[...].astype(jnp.float32)
    y = jnp.maximum(x * s_ref[...] + b_ref[...], 0.0)
    o_ref[...] = jnp.mean(y, axis=1, keepdims=True).astype(o_ref.dtype)


# --------------------------- Pallas wrappers --------------------------------

def matmul_fused(a, b, *, pre_scale=None, pre_shift=None, pre_relu=True,
                 post_scale=None, post_shift=None, post_relu=False,
                 out_dtype=jnp.bfloat16):
    """(M,K) @ (K,N) with optional fused per-K affine+ReLU prologue and
    per-N affine / bias-only (+ReLU) epilogue.  bf16 operands, f32 acc."""
    M, K = a.shape
    K2, N = b.shape
    assert K == K2
    a = a.astype(jnp.bfloat16)
    b = b.astype(jnp.bfloat16)

    Mp = _rup(M, 16)                              # bf16 sublane packing
    if Mp != M:
        a = jnp.pad(a, ((0, Mp - M), (0, 0)))
    tm = _pick_tm(Mp)
    tk = _pick_tk(K)
    tn = _pick_tn(N)

    pre = pre_scale is not None
    if post_scale is not None:
        post = "affine"
    elif post_shift is not None:
        post = "bias"
    else:
        post = None

    in_specs = [pl.BlockSpec((tm, tk), lambda i, j, k: (i, k)),
                pl.BlockSpec((tk, tn), lambda i, j, k: (k, j))]
    args = [a, b]
    if pre:
        in_specs += [pl.BlockSpec((1, tk), lambda i, j, k: (0, k)),
                     pl.BlockSpec((1, tk), lambda i, j, k: (0, k))]
        args += [pre_scale.reshape(1, K).astype(jnp.float32),
                 pre_shift.reshape(1, K).astype(jnp.float32)]
    if post == "affine":
        in_specs += [pl.BlockSpec((1, tn), lambda i, j, k: (0, j)),
                     pl.BlockSpec((1, tn), lambda i, j, k: (0, j))]
        args += [post_scale.reshape(1, N).astype(jnp.float32),
                 post_shift.reshape(1, N).astype(jnp.float32)]
    elif post == "bias":
        in_specs += [pl.BlockSpec((1, tn), lambda i, j, k: (0, j))]
        args += [post_shift.reshape(1, N).astype(jnp.float32)]

    out = pl.pallas_call(
        functools.partial(_mm_kernel, pre=pre, pre_relu=pre_relu,
                          post=post, post_relu=post_relu),
        out_shape=jax.ShapeDtypeStruct((Mp, N), out_dtype),
        grid_spec=pltpu.PrefetchScalarGridSpec(
            num_scalar_prefetch=0,
            grid=(pl.cdiv(Mp, tm), pl.cdiv(N, tn), pl.cdiv(K, tk)),
            in_specs=in_specs,
            out_specs=pl.BlockSpec((tm, tn), lambda i, j, k: (i, j)),
            scratch_shapes=[pltpu.VMEM((tm, tn), jnp.float32)]),
        compiler_params=pltpu.CompilerParams(
            dimension_semantics=("parallel", "parallel", "arbitrary")),
    )(*args)
    return out if Mp == M else out[:M]


def dense_layer_matmul(feats2d, c_in, w1p, s1p, b1p, s2, b2, w_wide):
    """One pallas_call per dense layer.  Reads only the first ceil(c_in/128)
    128-column tiles of the zero-padded block feature buffer through a
    K-limited grid, so the growing buffer is never sliced or copied."""
    M, c_buf = feats2d.shape
    Mp = _rup(M, 16)
    a = feats2d if Mp == M else jnp.pad(feats2d, ((0, Mp - M), (0, 0)))
    tk = 128
    kt = pl.cdiv(c_in, tk)            # ceil(c_in/128)*128 <= c_buf always
    tm = _pick_tm(Mp)
    n_tap = w_wide.shape[1]           # 9 * GROWTH = 288

    out = pl.pallas_call(
        _dense_layer_kernel,
        out_shape=jax.ShapeDtypeStruct((Mp, n_tap), jnp.bfloat16),
        grid_spec=pltpu.PrefetchScalarGridSpec(
            num_scalar_prefetch=0,
            grid=(pl.cdiv(Mp, tm), kt),
            in_specs=[
                pl.BlockSpec((tm, tk), lambda i, k: (i, k)),
                pl.BlockSpec((tk, BOTTLENECK), lambda i, k: (k, 0)),
                pl.BlockSpec((1, tk), lambda i, k: (0, k)),
                pl.BlockSpec((1, tk), lambda i, k: (0, k)),
                pl.BlockSpec((1, BOTTLENECK), lambda i, k: (0, 0)),
                pl.BlockSpec((1, BOTTLENECK), lambda i, k: (0, 0)),
                pl.BlockSpec((BOTTLENECK, n_tap), lambda i, k: (0, 0)),
            ],
            out_specs=pl.BlockSpec((tm, n_tap), lambda i, k: (i, 0)),
            scratch_shapes=[pltpu.VMEM((tm, BOTTLENECK), jnp.float32)]),
        compiler_params=pltpu.CompilerParams(
            dimension_semantics=("parallel", "arbitrary")),
    )(a, w1p, s1p, b1p, s2, b2, w_wide)
    return out if Mp == M else out[:M]


def _bn_relu_gap(x, scale, shift):
    """x: (N, H*W, C) -> (N, C): fused norm5 + ReLU + global average pool."""
    N, HW, C = x.shape
    out = pl.pallas_call(
        _bn_relu_gap_kernel,
        out_shape=jax.ShapeDtypeStruct((N, 1, C), x.dtype),
        grid=(N,),
        in_specs=[pl.BlockSpec((1, HW, C), lambda n: (n, 0, 0)),
                  pl.BlockSpec((1, 1, C), lambda n: (0, 0, 0)),
                  pl.BlockSpec((1, 1, C), lambda n: (0, 0, 0))],
        out_specs=pl.BlockSpec((1, 1, C), lambda n: (n, 0, 0)),
        compiler_params=pltpu.CompilerParams(
            dimension_semantics=("parallel",)),
    )(x, scale.reshape(1, 1, C).astype(jnp.float32),
      shift.reshape(1, 1, C).astype(jnp.float32))
    return out.reshape(N, C)


# --------------------------- layer helpers -----------------------------------

def _w_matrix(w):
    """PyTorch conv weight (Cout, Cin, kh, kw) -> im2col matrix (kh*kw*Cin, Cout)."""
    cout, cin, kh, kw = w.shape
    return jnp.transpose(w, (2, 3, 1, 0)).reshape(kh * kw * cin, cout)


def _im2col(x, kh, kw, stride, pad):
    """NHWC -> (N*Ho*Wo, kh*kw*C) patch matrix.  Only used for the 3-channel
    stem conv0 where the 49x tap duplication is a few MB and irrelevant."""
    N, H, W, C = x.shape
    if pad:
        x = jnp.pad(x, ((0, 0), (pad, pad), (pad, pad), (0, 0)))
    Ho = (H + 2 * pad - kh) // stride + 1
    Wo = (W + 2 * pad - kw) // stride + 1
    cols = [x[:, i:i + stride * Ho:stride, j:j + stride * Wo:stride, :]
            for i in range(kh) for j in range(kw)]
    patches = jnp.concatenate(cols, axis=-1).reshape(N * Ho * Wo, kh * kw * C)
    return patches, Ho, Wo


def _maxpool_3x3_s2_p1(x):
    # TODO(synk): in-kernel tap accumulation would remove the ~2.25x window
    # stack duplication; the stem tensor is small so keep the simple version.
    N, H, W, C = x.shape
    xp = jnp.pad(x, ((0, 0), (1, 1), (1, 1), (0, 0)), constant_values=-jnp.inf)
    Ho = (H + 2 - 3) // 2 + 1
    Wo = (W + 2 - 3) // 2 + 1
    wins = [xp[:, i:i + 2 * Ho:2, j:j + 2 * Wo:2, :]
            for i in range(3) for j in range(3)]
    M = N * Ho * Wo
    stk = jnp.stack(wins, 0).reshape(9, M, C)
    Mp = _rup(M, 16)
    if Mp != M:
        stk = jnp.pad(stk, ((0, 0), (0, Mp - M), (0, 0)))
    tm = min(256, Mp)
    out = pl.pallas_call(
        _maxpool_reduce_kernel,
        out_shape=jax.ShapeDtypeStruct((Mp, C), stk.dtype),
        grid=(pl.cdiv(Mp, tm),),
        in_specs=[pl.BlockSpec((9, tm, C), lambda i: (0, i, 0))],
        out_specs=pl.BlockSpec((tm, C), lambda i: (i, 0)),
        compiler_params=pltpu.CompilerParams(
            dimension_semantics=("parallel",)),
    )(stk)
    return out[:M].reshape(N, Ho, Wo, C)


def _tap_shift_add(yt):
    """y_tap (N,H,W,9*g) -> conv2 output (N,H,W,g): spatial shift-add of the 9
    per-tap chunks (zero outside the image == the conv's zero padding).
    TODO(synk): fold this shift-add into a Pallas epilogue kernel."""
    N, H, W, C9 = yt.shape
    g = C9 // 9
    ypad = jnp.pad(yt, ((0, 0), (1, 1), (1, 1), (0, 0)))
    out = jnp.zeros((N, H, W, g), jnp.float32)
    for t in range(9):
        i, j = divmod(t, 3)
        out = out + ypad[:, i:i + H, j:j + W, t * g:(t + 1) * g].astype(jnp.float32)
    return out.astype(jnp.bfloat16)


def _dense_layer(feats2d, c_in, lp, shape_nhw):
    """One DenseNet layer: fused (norm1+ReLU -> conv1 -> norm2+ReLU -> 9-tap
    conv2 matmul) kernel + plain-JAX spatial shift-add."""
    N, H, W = shape_nhw
    kpad = _rup(c_in, 128)

    # conv1 weight (128, c_in, 1, 1) -> (c_in, 128), zero-pad K to a 128 multiple
    # (padded rows are zero, so the unused / zero buffer columns contribute 0).
    w1 = jnp.transpose(lp["conv1"].reshape(BOTTLENECK, c_in), (1, 0))
    w1 = jnp.pad(w1, ((0, kpad - c_in), (0, 0))).astype(jnp.bfloat16)

    s1, b1 = lp["norm1"]
    s1 = jnp.pad(s1.astype(jnp.float32), (0, kpad - c_in),
                 constant_values=1.0).reshape(1, kpad)
    b1 = jnp.pad(b1.astype(jnp.float32), (0, kpad - c_in)).reshape(1, kpad)

    s2, b2 = lp["norm2"]
    s2 = s2.reshape(1, BOTTLENECK).astype(jnp.float32)
    b2 = b2.reshape(1, BOTTLENECK).astype(jnp.float32)

    # conv2 weight (32, 128, 3, 3) -> tap-wide (128, 9*32), tap t = i*3 + j.
    w2 = jnp.transpose(lp["conv2"], (2, 3, 1, 0)).reshape(9, BOTTLENECK, GROWTH)
    w2 = jnp.transpose(w2, (1, 0, 2)).reshape(BOTTLENECK, 9 * GROWTH)
    w2 = w2.astype(jnp.bfloat16)

    ytap = dense_layer_matmul(feats2d, c_in, w1, s1, b1, s2, b2, w2)
    return _tap_shift_add(ytap.reshape(N, H, W, 9 * GROWTH))


def _dense_block(x, layers):
    """Dense block with a preallocated full-width feature buffer: each layer
    reads only its valid K prefix (K-limited grid) and appends its 32 channels
    with an in-place-able .at[].set() -- no O(L^2) concatenation."""
    N, H, W, C0 = x.shape
    M = N * H * W
    c_final = C0 + GROWTH * len(layers)
    feats = jnp.zeros((M, c_final), jnp.bfloat16)
    feats = feats.at[:, :C0].set(x.reshape(M, C0).astype(jnp.bfloat16))
    c = C0
    for lp in layers:
        new = _dense_layer(feats, c, lp, (N, H, W))            # (N, H, W, 32)
        feats = feats.at[:, c:c + GROWTH].set(
            new.reshape(M, GROWTH).astype(jnp.bfloat16))
        c += GROWTH
    return feats.reshape(N, H, W, c_final)


def _transition(x, tp):
    """Transition = norm+ReLU -> 1x1 conv -> 2x2 avg pool.  The (linear) pool
    is commuted in front of the 1x1 conv and its 4 non-overlapping taps are
    folded into the matmul K axis, so the whole transition is one pallas_call
    running at quarter resolution."""
    N, H, W, C = x.shape
    Ho, Wo = H // 2, W // 2
    x = x[:, :2 * Ho, :2 * Wo, :]
    views = [x[:, di::2, dj::2, :] for di in range(2) for dj in range(2)]
    a = jnp.concatenate(views, axis=-1).reshape(N * Ho * Wo, 4 * C)

    s, b = tp["norm"]
    cout = tp["conv"].shape[0]
    wc = jnp.transpose(tp["conv"].reshape(cout, C), (1, 0)).astype(jnp.float32)
    bmat = (0.25 * jnp.concatenate([wc] * 4, axis=0)).astype(jnp.bfloat16)

    y = matmul_fused(a, bmat,
                     pre_scale=jnp.tile(s, 4), pre_shift=jnp.tile(b, 4),
                     pre_relu=True)
    return y.reshape(N, Ho, Wo, cout)


# --------------------------- parameters (deterministic) ----------------------

class _KeyGen:
    def __init__(self, seed):
        self._base = jax.random.PRNGKey(seed)
        self._n = 0

    def __call__(self):
        self._n += 1
        return jax.random.fold_in(self._base, self._n)


def _conv_init(key, cout, cin, k):
    std = (2.0 / (k * k * cin)) ** 0.5  # He init (all convs are bias-free)
    w = std * jax.random.normal(key, (cout, cin, k, k), jnp.float32)
    return w.astype(jnp.bfloat16)


def _bn_init(key, c, eps=1e-5):
    k1, k2 = jax.random.split(key)
    gamma = 1.0 + 0.1 * jax.random.normal(k1, (c,), jnp.float32)
    beta = 0.1 * jax.random.normal(k2, (c,), jnp.float32)
    running_mean = jnp.zeros((c,), jnp.float32)
    running_var = jnp.ones((c,), jnp.float32)
    scale = gamma / jnp.sqrt(running_var + eps)
    shift = beta - running_mean * scale
    return scale, shift


def init_densenet121_params(seed=0):
    kg = _KeyGen(seed)
    block_cfg = (6, 12, 24, 16)
    p = {}
    p["conv0"] = _conv_init(kg(), 64, 3, 7)
    p["norm0"] = _bn_init(kg(), 64)
    nf = 64
    blocks, transitions = [], []
    for bi, num_layers in enumerate(block_cfg):
        layers = []
        for li in range(num_layers):
            cin = nf + li * GROWTH
            layers.append(dict(
                norm1=_bn_init(kg(), cin),
                conv1=_conv_init(kg(), BOTTLENECK, cin, 1),
                norm2=_bn_init(kg(), BOTTLENECK),
                conv2=_conv_init(kg(), GROWTH, BOTTLENECK, 3),
            ))
        blocks.append(layers)
        nf += num_layers * GROWTH
        if bi != len(block_cfg) - 1:
            transitions.append(dict(norm=_bn_init(kg(), nf),
                                    conv=_conv_init(kg(), nf // 2, nf, 1)))
            nf //= 2
    p["blocks"] = blocks
    p["transitions"] = transitions
    p["norm5"] = _bn_init(kg(), nf)  # nf == 1024
    p["fc_w"] = ((1.0 / nf ** 0.5) * jax.random.normal(
        kg(), (1000, nf), jnp.float32)).astype(jnp.bfloat16)
    p["fc_b"] = jnp.zeros((1000,), jnp.float32)
    return p


# --------------------------- forward pass ------------------------------------

def densenet121_forward(x_nchw, params):
    x = jnp.transpose(x_nchw, (0, 2, 3, 1)).astype(jnp.bfloat16)  # NCHW -> NHWC
    N = x.shape[0]

    # conv0 (7x7 / stride 2 / pad 3) with norm0+ReLU fused into the epilogue.
    patches, Ho, Wo = _im2col(x, 7, 7, 2, 3)
    s0, b0 = params["norm0"]
    y = matmul_fused(patches, _w_matrix(params["conv0"]),
                     post_scale=s0, post_shift=b0, post_relu=True)
    y = y.reshape(N, Ho, Wo, 64)
    y = _maxpool_3x3_s2_p1(y)

    for bi in range(4):
        y = _dense_block(y, params["blocks"][bi])
        if bi < 3:
            y = _transition(y, params["transitions"][bi])

    # end of .features (norm5) + forward(): ReLU -> GAP -> flatten -> classifier
    s5, b5 = params["norm5"]
    Nn, H, W, C = y.shape
    pooled = _bn_relu_gap(y.reshape(Nn, H * W, C), s5, b5)          # (N, 1024)

    # classifier: weight/bias zero-padded to 1024 lanes (lane-dense stores),
    # bias-only epilogue, logits cropped back to 1000.
    wfc = jnp.transpose(params["fc_w"], (1, 0)).astype(jnp.bfloat16)
    wfc = jnp.pad(wfc, ((0, 0), (0, 24)))
    bfc = jnp.pad(params["fc_b"], (0, 24))
    logits = matmul_fused(pooled, wfc, post_shift=bfc, out_dtype=jnp.float32)
    return logits[:, :1000]


# --------------------------- demo ---------------------------------------------

if __name__ == "__main__":
    params = init_densenet121_params(seed=0)
    x = jax.random.normal(jax.random.PRNGKey(0), (2, 3, 32, 32), jnp.float32)
    out = densenet121_forward(x, params)
    out = jax.block_until_ready(out)
    assert out.shape == (2, 1000), out.shape
    assert bool(jnp.all(jnp.isfinite(out)))
    print("KERNEL_OK")
</pallas_src>

<mosaic_0001>
module attributes {stable_mosaic.version = 11 : i64} {
  func.func @_mm_kernel(%arg0: i32, %arg1: i32, %arg2: i32, %arg3: memref<256x147xbf16, #tpu.memory_space<vmem>>, %arg4: memref<147x64xbf16, #tpu.memory_space<vmem>>, %arg5: memref<1x64xf32, #tpu.memory_space<vmem>>, %arg6: memref<1x64xf32, #tpu.memory_space<vmem>>, %arg7: memref<256x64xbf16, #tpu.memory_space<vmem>>, %arg8: memref<256x64xf32, #tpu.memory_space<vmem>>) attributes {dimension_semantics = [#tpu.dimension_semantics<parallel>, #tpu.dimension_semantics<parallel>, #tpu.dimension_semantics<arbitrary>], iteration_bounds = array<i64: 2, 1, 1>, scalar_prefetch = 0 : i64, scratch_operands = 1 : i64, tpu.core_type = #tpu.core_type<tc>, window_params = [{transform_indices = @transform_0, window_bounds = array<i64: 256, 147>}, {transform_indices = @transform_1, window_bounds = array<i64: 147, 64>}, {transform_indices = @transform_2, window_bounds = array<i64: 1, 64>}, {transform_indices = @transform_3, window_bounds = array<i64: 1, 64>}, {transform_indices = @transform_4, window_bounds = array<i64: 256, 64>}]} {
    %c0_i32 = arith.constant 0 : i32
    %0 = arith.cmpi eq, %arg2, %c0_i32 : i32
    %1 = arith.extui %0 : i1 to i32
    %c0_i32_0 = arith.constant 0 : i32
    %2 = arith.cmpi ne, %1, %c0_i32_0 : i32
    scf.if %2 {
      %cst_10 = arith.constant 0.000000e+00 : f32
      %12 = vector.broadcast %cst_10 : f32 to vector<256x64xf32>
      %c0_11 = arith.constant 0 : index
      %c0_12 = arith.constant 0 : index
      %13 = vector.load %arg8[%c0_11, %c0_12] : memref<256x64xf32, #tpu.memory_space<vmem>>, vector<256x64xf32>
      tpu.vector_store %arg8[%c0_11, %c0_12], %12 {strides = array<i32>} : memref<256x64xf32, #tpu.memory_space<vmem>>, vector<256x64xf32>,
    } else {
    }
    %c0 = arith.constant 0 : index
    %c0_1 = arith.constant 0 : index
    %3 = vector.load %arg3[%c0, %c0_1] : memref<256x147xbf16, #tpu.memory_space<vmem>>, vector<256x147xbf16>
    %c0_2 = arith.constant 0 : index
    %c0_3 = arith.constant 0 : index
    %4 = vector.load %arg8[%c0_2, %c0_3] : memref<256x64xf32, #tpu.memory_space<vmem>>, vector<256x64xf32>
    %c0_4 = arith.constant 0 : index
    %c0_5 = arith.constant 0 : index
    %5 = vector.load %arg4[%c0_4, %c0_5] : memref<147x64xbf16, #tpu.memory_space<vmem>>, vector<147x64xbf16>
    %cst = arith.constant dense<0.000000e+00> : vector<256x64xf32>
    %6 = tpu.matmul %3, %5, %cst {dimension_numbers = #tpu.dot_dimension_numbers<[1], [0], [0], [1], [0, 0, 1, 1], [], []>} : vector<256x147xbf16>, vector<147x64xbf16>, vector<256x64xf32> -> vector<256x64xf32>
    %7 = arith.addf %4, %6 : vector<256x64xf32>
    %c0_6 = arith.constant 0 : index
    %c0_7 = arith.constant 0 : index
    %8 = vector.load %arg8[%c0_6, %c0_7] : memref<256x64xf32, #tpu.memory_space<vmem>>, vector<256x64xf32>
    tpu.vector_store %arg8[%c0_6, %c0_7], %7 {strides = array<i32>} : memref<256x64xf32, #tpu.memory_space<vmem>>, vector<256x64xf32>,
    %c0_i32_8 = arith.constant 0 : i32
    %9 = arith.cmpi eq, %arg2, %c0_i32_8 : i32
    %10 = arith.extui %9 : i1 to i32
    %c0_i32_9 = arith.constant 0 : i32
    %11 = arith.cmpi ne, %10, %c0_i32_9 : i32
    scf.if %11 {
      %c0_10 = arith.constant 0 : index
      %c0_11 = arith.constant 0 : index
      %12 = vector.load %arg8[%c0_10, %c0_11] : memref<256x64xf32, #tpu.memory_space<vmem>>, vector<256x64xf32>
      %c0_12 = arith.constant 0 : index
      %c0_13 = arith.constant 0 : index
      %13 = vector.load %arg5[%c0_12, %c0_13] : memref<1x64xf32, #tpu.memory_space<vmem>>, vector<1x64xf32>
      %14 = vector.broadcast %13 : vector<1x64xf32> to vector<256x64xf32>
      %15 = arith.mulf %12, %14 : vector<256x64xf32>
      %c0_14 = arith.constant 0 : index
      %c0_15 = arith.constant 0 : index
      %16 = vector.load %arg6[%c0_14, %c0_15] : memref<1x64xf32, #tpu.memory_space<vmem>>, vector<1x64xf32>
      %17 = vector.broadcast %16 : vector<1x64xf32> to vector<256x64xf32>
      %18 = arith.addf %15, %17 : vector<256x64xf32>
      %cst_16 = arith.constant 0.000000e+00 : f32
      %19 = vector.broadcast %cst_16 : f32 to vector<256x64xf32>
      %20 = arith.maximumf %18, %19 : vector<256x64xf32>
      %21 = arith.truncf %20 : vector<256x64xf32> to vector<256x64xbf16>
      %c0_17 = arith.constant 0 : index
      %c0_18 = arith.constant 0 : index
      %22 = vector.load %arg7[%c0_17, %c0_18] : memref<256x64xbf16, #tpu.memory_space<vmem>>, vector<256x64xbf16>
      tpu.vector_store %arg7[%c0_17, %c0_18], %21 {strides = array<i32>} : memref<256x64xbf16, #tpu.memory_space<vmem>>, vector<256x64xbf16>,
    } else {
    }
    return
  }
  func.func @transform_0(%arg0: i32, %arg1: i32, %arg2: i32) -> (i32, i32) {
    %c0_i32 = arith.constant 0 : i32
    return %arg0, %arg2 : i32, i32
  }
  func.func @transform_1(%arg0: i32, %arg1: i32, %arg2: i32) -> (i32, i32) {
    %c0_i32 = arith.constant 0 : i32
    return %arg2, %arg1 : i32, i32
  }
  func.func @transform_2(%arg0: i32, %arg1: i32, %arg2: i32) -> (i32, i32) {
    %c0_i32 = arith.constant 0 : i32
    %c0_i32_0 = arith.constant 0 : i32
    return %c0_i32, %arg1 : i32, i32
  }
  func.func @transform_3(%arg0: i32, %arg1: i32, %arg2: i32) -> (i32, i32) {
    %c0_i32 = arith.constant 0 : i32
    %c0_i32_0 = arith.constant 0 : i32
    return %c0_i32, %arg1 : i32, i32
  }
  func.func @transform_4(%arg0: i32, %arg1: i32, %arg2: i32) -> (i32, i32) {
    %c0_i32 = arith.constant 0 : i32
    return %arg0, %arg1 : i32, i32
  }
}

</mosaic_0001>

<bundles_post_ra>
// kernel: tpu_custom_call.1
= control target key start
LH: loop header
LB: loop body
LE: loop exit
PB: predicated region body
PF: predicated region fallthrough
CT: control target
= control target key end

     0   :  { %s1641_s15 = smov 0   ;;  %s1643_s16 = smov 0   ;;  %s1984_s0 = inlined_call_operand.vmem [shape: bf16[512,147], index: 0, kind: input, shape index: {}]   ;;  %s1985_s1 = inlined_call_operand.vmem [shape: bf16[147,64], index: 1, kind: input, shape index: {}]   ;;  %s1986_s2 = inlined_call_operand.vmem [shape: f32[1,64], index: 2, kind: input, shape index: {}]   ;;  %s1987_s3 = inlined_call_operand.vmem [shape: f32[1,64], index: 3, kind: input, shape index: {}]   ;;  %s1988_s4 = inlined_call_operand.vmem [shape: bf16[512,64], index: 4, kind: output, shape index: {}]  }
   0x1   :  { %s1645_s17 = smov 0  }
   0x2 LB: > { %s33_s18 = sadd.s32 1, %s1607_s16  ;;  %p1351_p0 = scmp.ge.s32.totalorder %s1611_s17, 1  ;;  %s1611_s17 = sphi %s1645_s17, %s14_s17   ;;  %s1607_s16 = sphi %s1643_s16, %s1990_s16   ;;  %s1603_s15 = sphi %s1641_s15, %s1989_s15  }
   0x3   : > { %p35_p1 = scmp.ge.s32.totalorder %s33_s18, 2  ;;  %p224_p2 = scmp.lt.s32.totalorder %s1611_s17, 3 }
   0x5   : > { %s1992_s18 = smov (%p35_p1, %s33_s18), 0  ;;  %p225_p3 = pnand %p1351_p0, %p224_p2 }
   0x6   : > { %s1352_s25 = sshll.u32 (!%p225_p3), %s1603_s15, 5 }
   0x7   : > { %228 = sbr.rel (%p225_p3) target bundleno = 326 (0x146), region = 36  ;;  %p274_p4 = scmp.lt.s32.totalorder (!%p225_p3), %s1352_s25, 63 }
   0xc   : > { %v1531_v0 = vld [vmem:[%s1985_s1 + $0x38] sm:$0xff]   ;;  %v1613_v1 = vmov 0   ;;  %v1532_v2 = vld [vmem:[%s1985_s1 + $0x30] sm:$0xff]   ;;  %v1533_v3 = vld [vmem:[%s1985_s1 + $0x28] sm:$0xff]   ;;  %s1994_s25 = smov (!%p274_p4, %s1352_s25), 63  ;;  %vm313_vm0 = vcmask 523264  }
   0xd   : > { %686 = vmatprep.subr.bf16.mxu0 %v1613_v1  ;;  %1484 = vmatprep.subr.bf16.mxu1 %v1613_v1  ;;  %v1534_v4 = vld [vmem:[%s1985_s1 + $0x20] sm:$0xff]   ;;  %s1451_s28 = sshll.u32 %s1994_s25, 3  ;;  %v1614_v5 = vmov 0.0   ;;  %v1535_v6 = vld [vmem:[%s1985_s1 + $0x18] sm:$0xff]   ;;  %vm630_vm1 = vcmask 154624   ;;  %v1536_v9 = vld [vmem:[%s1985_s1 + $0x10] sm:$0xff]  }
   0xe   : > { %687 = vmatpush1.bf16.msra.mxu0 %v1531_v0  ;;  %1494 = vmatpush1.bf16.msra.mxu1 %v1531_v0  ;;  %314 = vst.msk [vmem:[#allocation2] sm:$0xff] %vm313_vm0, %v1614_v5  ;;  %315 = vst.msk [vmem:[#allocation2 + $0x8] sm:$0xff] %vm313_vm0, %v1614_v5  ;;  %s1719_s5 = scalar_lea.vmem %s1984_s0, %s1451_s28  ;;  %vm679_vm2 = vcmask 1040384   ;;  %v1537_v10 = vld [vmem:[%s1985_s1 + $0x8] sm:$0xff]   ;;  %vm680_vm3 = vcmask 1041408   ;;  %v1615_v11 = vmov 65535  }
   0xf   : > { %688 = vmatprep.subr.bf16.mxu0 %v1613_v1  ;;  %1485 = vmatprep.subr.bf16.mxu1 %v1613_v1  ;;  %316 = vst.msk [vmem:[#allocation2 + $0x10] sm:$0xff] %vm313_vm0, %v1614_v5  ;;  %317 = vst.msk [vmem:[#allocation2 + $0x18] sm:$0xff] %vm313_vm0, %v1614_v5  ;;  %v1543_v7 = vld [vmem:[%s1719_s5 + $0x4] ss:$8 sps:$4 sm:$0xff]   ;;  %v681_v12 = vsel %vm679_vm2, 4294967295, %v1615_v11  ;;  %s1356_s26 = sshll.u32 %s1994_s25, 2 }
  0x10   : > { %318 = vst.msk [vmem:[#allocation2 + $0x20] sm:$0xff] %vm313_vm0, %v1614_v5  ;;  %319 = vst.msk [vmem:[#allocation2 + $0x28] sm:$0xff] %vm313_vm0, %v1614_v5  ;;  %v1546_v8 = vld [vmem:[%s1719_s5 + $0x84] ss:$8 sps:$4 sm:$0xff]   ;;  %1399 = vmatprep.mubr.msk.bf16.mxu0 %vm630_vm1, %v1543_v7  ;;  %v682_v15 = vsel %vm680_vm3, %v681_v12, 0  ;;  %s1827_s28 = scalar_lea.vmem %s1988_s4, %s1356_s26  ;;  %vm1185_vm4 = vcmask 519168  }
  0x11   : > { %320 = vst.msk [vmem:[#allocation2 + $0x30] sm:$0xff] %vm313_vm0, %v1614_v5  ;;  %321 = vst.msk [vmem:[#allocation2 + $0x38] sm:$0xff] %vm313_vm0, %v1614_v5  ;;  %1407 = vmatprep.mubr.msk.bf16.mxu1 %vm630_vm1, %v1546_v8  ;;  %v1538_v13 = vld [vmem:[%s1985_s1] sm:$0xff]   ;;  %v1539_v14 = vld [vmem:[%s1985_s1 + $0x48] ss:$0 sps:$4 sm:$0x33]  }
  0x12   : > { %689 = vmatpush1.bf16.msra.mxu0 %v1532_v2  ;;  %1495 = vmatpush1.bf16.msra.mxu1 %v1532_v2  ;;  %322 = vst.msk [vmem:[#allocation2 + $0x40] sm:$0xff] %vm313_vm0, %v1614_v5  ;;  %323 = vst.msk [vmem:[#allocation2 + $0x48] sm:$0xff] %vm313_vm0, %v1614_v5  ;;  %v684_v16 = vand.u32 %v1539_v14, %v682_v15  ;;  %v1540_v17 = vld [vmem:[%s1985_s1 + $0x40] sm:$0xff]   ;;  %v1547_v20 = vld [vmem:[%s1719_s5 + $0x14] ss:$8 sps:$4 sm:$0xff]  }
  0x13   : > { %690 = vmatprep.subr.bf16.mxu0 %v1613_v1  ;;  %1486 = vmatprep.subr.bf16.mxu1 %v1613_v1  ;;  %324 = vst.msk [vmem:[#allocation2 + $0x50] sm:$0xff] %vm313_vm0, %v1614_v5  ;;  %325 = vst.msk [vmem:[#allocation2 + $0x58] sm:$0xff] %vm313_vm0, %v1614_v5  ;;  %v1541_v18 = vld [vmem:[%s1719_s5] ss:$8 sps:$4 sm:$0xff]   ;;  %v1549_v21 = vld [vmem:[%s1719_s5 + $0x94] ss:$8 sps:$4 sm:$0xff]  }
  0x14   : > { %326 = vst.msk [vmem:[#allocation2 + $0x60] sm:$0xff] %vm313_vm0, %v1614_v5  ;;  %327 = vst.msk [vmem:[#allocation2 + $0x68] sm:$0xff] %vm313_vm0, %v1614_v5  ;;  %v1544_v19 = vld [vmem:[%s1719_s5 + $0x80] ss:$8 sps:$4 sm:$0xff]   ;;  %v1551_v22 = vld [vmem:[%s1719_s5 + $0x10] ss:$8 sps:$4 sm:$0xff]  }
  0x15   : > { %328 = vst.msk [vmem:[#allocation2 + $0x70] sm:$0xff] %vm313_vm0, %v1614_v5  ;;  %329 = vst.msk [vmem:[#allocation2 + $0x78] sm:$0xff] %vm313_vm0, %v1614_v5  ;;  %v1552_v23 = vld [vmem:[%s1719_s5 + $0x90] ss:$8 sps:$4 sm:$0xff]   ;;  %v1553_v24 = vld [vmem:[%s1719_s5 + $0x24] ss:$8 sps:$4 sm:$0xff]  }
  0x16   : > { %691 = vmatpush1.bf16.msra.mxu0 %v1533_v3  ;;  %1496 = vmatpush1.bf16.msra.mxu1 %v1533_v3  ;;  %330 = vst.msk [vmem:[#allocation2 + $0x80] sm:$0xff] %vm313_vm0, %v1614_v5  ;;  %331 = vst.msk [vmem:[#allocation2 + $0x88] sm:$0xff] %vm313_vm0, %v1614_v5  ;;  %v1555_v25 = vld [vmem:[%s1719_s5 + $0xa4] ss:$8 sps:$4 sm:$0xff]   ;;  %v1557_v26 = vld [vmem:[%s1719_s5 + $0x20] ss:$8 sps:$4 sm:$0xff]  }
  0x17   : > { %692 = vmatprep.subr.bf16.mxu0 %v1613_v1  ;;  %1487 = vmatprep.subr.bf16.mxu1 %v1613_v1  ;;  %332 = vst.msk [vmem:[#allocation2 + $0x90] sm:$0xff] %vm313_vm0, %v1614_v5  ;;  %333 = vst.msk [vmem:[#allocation2 + $0x98] sm:$0xff] %vm313_vm0, %v1614_v5  ;;  %v1558_v27 = vld [vmem:[%s1719_s5 + $0xa0] ss:$8 sps:$4 sm:$0xff]   ;;  %v1559_v28 = vld [vmem:[%s1719_s5 + $0x34] ss:$8 sps:$4 sm:$0xff]  }
  0x18   : > { %334 = vst.msk [vmem:[#allocation2 + $0xa0] sm:$0xff] %vm313_vm0, %v1614_v5  ;;  %335 = vst.msk [vmem:[#allocation2 + $0xa8] sm:$0xff] %vm313_vm0, %v1614_v5  ;;  %v1561_v29 = vld [vmem:[%s1719_s5 + $0xb4] ss:$8 sps:$4 sm:$0xff]   ;;  %v1563_v30 = vld [vmem:[%s1719_s5 + $0x30] ss:$8 sps:$4 sm:$0xff]  }
  0x19   : > { %336 = vst.msk [vmem:[#allocation2 + $0xb0] sm:$0xff] %vm313_vm0, %v1614_v5  ;;  %337 = vst.msk [vmem:[#allocation2 + $0xb8] sm:$0xff] %vm313_vm0, %v1614_v5  ;;  %v1564_v31 = vld [vmem:[%s1719_s5 + $0xb0] ss:$8 sps:$4 sm:$0xff]   ;;  %v1565_v32 = vld [vmem:[%s1719_s5 + $0x44] ss:$8 sps:$4 sm:$0xff]  }
  0x1a   : > { %338 = vst.msk [vmem:[#allocation2 + $0xc0] sm:$0xff] %vm313_vm0, %v1614_v5  ;;  %339 = vst.msk [vmem:[#allocation2 + $0xc8] sm:$0xff] %vm313_vm0, %v1614_v5  ;;  %693 = vmatpush1.bf16.msra.mxu0 %v1534_v4  ;;  %1497 = vmatpush1.bf16.msra.mxu1 %v1534_v4  ;;  %v1567_v33 = vld [vmem:[%s1719_s5 + $0xc4] ss:$8 sps:$4 sm:$0xff]   ;;  %v1569_v34 = vld [vmem:[%s1719_s5 + $0x40] ss:$8 sps:$4 sm:$0xff]  }
  0x1b   : > { %340 = vst.msk [vmem:[#allocation2 + $0xd0] sm:$0xff] %vm313_vm0, %v1614_v5  ;;  %341 = vst.msk [vmem:[#allocation2 + $0xd8] sm:$0xff] %vm313_vm0, %v1614_v5  ;;  %694 = vmatprep.subr.bf16.mxu0 %v1613_v1  ;;  %1488 = vmatprep.subr.bf16.mxu1 %v1613_v1  ;;  %v1570_v35 = vld [vmem:[%s1719_s5 + $0xc0] ss:$8 sps:$4 sm:$0xff]   ;;  %v1571_v36 = vld [vmem:[%s1719_s5 + $0x54] ss:$8 sps:$4 sm:$0xff]  }
  0x1c   : > { %342 = vst.msk [vmem:[#allocation2 + $0xe0] sm:$0xff] %vm313_vm0, %v1614_v5  ;;  %343 = vst.msk [vmem:[#allocation2 + $0xe8] sm:$0xff] %vm313_vm0, %v1614_v5  ;;  %v1573_v37 = vld [vmem:[%s1719_s5 + $0xd4] ss:$8 sps:$4 sm:$0xff]   ;;  %v1575_v38 = vld [vmem:[%s1719_s5 + $0x50] ss:$8 sps:$4 sm:$0xff]  }
  0x1d   : > { %344 = vst.msk [vmem:[#allocation2 + $0xf0] sm:$0xff] %vm313_vm0, %v1614_v5  ;;  %345 = vst.msk [vmem:[#allocation2 + $0xf8] sm:$0xff] %vm313_vm0, %v1614_v5  ;;  %v1576_v39 = vld [vmem:[%s1719_s5 + $0xd0] ss:$8 sps:$4 sm:$0xff]   ;;  %v1577_v40 = vld [vmem:[%s1719_s5 + $0x64] ss:$8 sps:$4 sm:$0xff]  }
  0x1e   : > { %695 = vmatpush1.bf16.msra.mxu0 %v1535_v6  ;;  %1498 = vmatpush1.bf16.msra.mxu1 %v1535_v6  ;;  %v1579_v41 = vld [vmem:[%s1719_s5 + $0xe4] ss:$8 sps:$4 sm:$0xff]   ;;  %v1581_v42 = vld [vmem:[%s1719_s5 + $0x60] ss:$8 sps:$4 sm:$0xff]   ;;  %v1583_v44 = vld [vmem:[%s1719_s5 + $0x74] ss:$8 sps:$4 sm:$0xff]  }
  0x1f   : > { %696 = vmatprep.subr.bf16.mxu0 %v1613_v1  ;;  %1489 = vmatprep.subr.bf16.mxu1 %v1613_v1  ;;  %v1582_v43 = vld [vmem:[%s1719_s5 + $0xe0] ss:$8 sps:$4 sm:$0xff]   ;;  %v1585_v45 = vld [vmem:[%s1719_s5 + $0xf4] ss:$8 sps:$4 sm:$0xff]   ;;  %v1587_v46 = vld [vmem:[%s1719_s5 + $0x70] ss:$8 sps:$4 sm:$0xff]  }
  0x20   : > { %v1588_v47 = vld [vmem:[%s1719_s5 + $0xf0] ss:$8 sps:$4 sm:$0xff]   ;;  %v378_v48 = vld [vmem:[#allocation2] sm:$0xff]  ;;  %v379_v56 = vld [vmem:[#allocation2 + $0x8] sm:$0xff] }
  0x21   : > { %v394_v49 = vld [vmem:[#allocation2 + $0x80] sm:$0xff]  ;;  %v395_v57 = vld [vmem:[#allocation2 + $0x88] sm:$0xff]  ;;  %v380_v0 = vld [vmem:[#allocation2 + $0x10] sm:$0xff] }
  0x22   : > { %697 = vmatpush1.bf16.msra.mxu0 %v1536_v9  ;;  %1499 = vmatpush1.bf16.msra.mxu1 %v1536_v9  ;;  %v1806_v2 = vld [vmem:[%s1986_s2] ss:$0 sm:$0xff]  ;;  %v381_v8 = vld [vmem:[#allocation2 + $0x18] sm:$0xff] }
  0x23   : > { %698 = vmatprep.subr.bf16.mxu0 %v1613_v1  ;;  %1490 = vmatprep.subr.bf16.mxu1 %v1613_v1  ;;  %v1811_v5 = vld [vmem:[%s1987_s3] ss:$0 sm:$0xff] }
  0x26   : > { %699 = vmatpush1.bf16.msra.mxu0 %v1537_v10  ;;  %1500 = vmatpush1.bf16.msra.mxu1 %v1537_v10 }
  0x27   : > { %700 = vmatprep.subr.bf16.mxu0 %v1613_v1  ;;  %1491 = vmatprep.subr.bf16.mxu1 %v1613_v1 }
  0x2a   : > { %701 = vmatpush1.bf16.msra.mxu0 %v1538_v13  ;;  %1501 = vmatpush1.bf16.msra.mxu1 %v1538_v13  ;;  %v397_v13 = vld [vmem:[#allocation2 + $0x98] sm:$0xff] }
  0x2b   : > { %714 = vmatprep.subr.bf16.mxu0 %v1613_v1  ;;  %1492 = vmatprep.subr.bf16.mxu1 %v1613_v1 }
  0x2e   : > { %715 = vmatpush2.bf16.msra.mxu0 %v684_v16  ;;  %1502 = vmatpush2.bf16.msra.mxu1 %v684_v16 }
  0x2f   : > { %716 = vmatprep.subr.bf16.mxu0 %v1613_v1  ;;  %1493 = vmatprep.subr.bf16.mxu1 %v1613_v1  ;;  %v396_v1 = vld [vmem:[#allocation2 + $0x90] sm:$0xff] }
  0x32   : > { %717 = vmatpush2.bf16.msra.mxu0 %v1540_v17  ;;  %1503 = vmatpush2.bf16.msra.mxu1 %v1540_v17 }
  0x35   : > { %719 = vmatmul.mubr.bf16.vlgmr.msra.gmra.mxu0 %v1541_v18  ;;  %783 = vmatmul.mubr.bf16.vlgmr.msra.gmra.mxu1 %v1544_v19 }
  0x36   : > { %1400 = vmatprep.mubr.msk.bf16.mxu0 %vm630_vm1, %v1547_v20  ;;  %1408 = vmatprep.mubr.msk.bf16.mxu1 %vm630_vm1, %v1549_v21 }
  0x3d   : > { %727 = vmatmul.mubr.bf16.gmra.mxu0 %v1551_v22  ;;  %791 = vmatmul.mubr.bf16.gmra.mxu1 %v1552_v23 }
  0x3e   : > { %1401 = vmatprep.mubr.msk.bf16.mxu0 %vm630_vm1, %v1553_v24  ;;  %1409 = vmatprep.mubr.msk.bf16.mxu1 %vm630_vm1, %v1555_v25 }
  0x45   : > { %735 = vmatmul.mubr.bf16.gmra.mxu0 %v1557_v26  ;;  %799 = vmatmul.mubr.bf16.gmra.mxu1 %v1558_v27 }
  0x46   : > { %1402 = vmatprep.mubr.msk.bf16.mxu0 %vm630_vm1, %v1559_v28  ;;  %1410 = vmatprep.mubr.msk.bf16.mxu1 %vm630_vm1, %v1561_v29 }
  0x4d   : > { %743 = vmatmul.mubr.bf16.gmra.mxu0 %v1563_v30  ;;  %807 = vmatmul.mubr.bf16.gmra.mxu1 %v1564_v31  ;;  %v382_v30 = vld [vmem:[#allocation2 + $0x20] sm:$0xff] }
  0x4e   : > { %1403 = vmatprep.mubr.msk.bf16.mxu0 %vm630_vm1, %v1565_v32  ;;  %1411 = vmatprep.mubr.msk.bf16.mxu1 %vm630_vm1, %v1567_v33  ;;  %v398_v31 = vld [vmem:[#allocation2 + $0xa0] sm:$0xff] }
  0x55   : > { %751 = vmatmul.mubr.bf16.gmra.mxu0 %v1569_v34  ;;  %815 = vmatmul.mubr.bf16.gmra.mxu1 %v1570_v35 }
  0x56   : > { %1404 = vmatprep.mubr.msk.bf16.mxu0 %vm630_vm1, %v1571_v36  ;;  %1412 = vmatprep.mubr.msk.bf16.mxu1 %vm630_vm1, %v1573_v37 }
  0x5d   : > { %759 = vmatmul.mubr.bf16.gmra.mxu0 %v1575_v38  ;;  %823 = vmatmul.mubr.bf16.gmra.mxu1 %v1576_v39 }
  0x5e   : > { %1405 = vmatprep.mubr.msk.bf16.mxu0 %vm630_vm1, %v1577_v40  ;;  %1413 = vmatprep.mubr.msk.bf16.mxu1 %vm630_vm1, %v1579_v41 }
  0x65   : > { %767 = vmatmul.mubr.bf16.gmra.mxu0 %v1581_v42  ;;  %831 = vmatmul.mubr.bf16.gmra.mxu1 %v1582_v43 }
  0x66   : > { %1406 = vmatprep.mubr.msk.bf16.mxu0 %vm630_vm1, %v1583_v44  ;;  %1414 = vmatprep.mubr.msk.bf16.mxu1 %vm630_vm1, %v1585_v45 }
  0x6d   : > { %775 = vmatmul.mubr.bf16.gmra.mxu0 %v1587_v46  ;;  %839 = vmatmul.mubr.bf16.gmra.mxu1 %v1588_v47 }
  0xf5   : > { %v720_v50 = vpop.f32.mrf.mxu0  ;;  %v784_v51 = vpop.f32.mrf.mxu1 }
  0xf6   : > { %v847_v52 = vadd.f32 %v720_v50, %v378_v48  ;;  %v863_v53 = vadd.f32 %v784_v51, %v394_v49  ;;  %v383_v48 = vld [vmem:[#allocation2 + $0x28] sm:$0xff] }
  0xf7   : > { %v722_v54 = vpop.f32.mrf.mxu0  ;;  %v786_v55 = vpop.f32.mrf.mxu1  ;;  %v399_v49 = vld [vmem:[#allocation2 + $0xa8] sm:$0xff] }
  0xf8   : > { %880 = vst.msk [vmem:[#allocation2] sm:$0xff] %vm313_vm0, %v847_v52  ;;  %896 = vst.msk [vmem:[#allocation2 + $0x80] sm:$0xff] %vm313_vm0, %v863_v53 }
  0xf9   : > { %v723_v58 = vpop.f32.mrf.mxu0  ;;  %v787_v59 = vpop.f32.mrf.mxu1 }
  0xfa   : > { %v848_v60 = vadd.f32 %v723_v58, %v379_v56  ;;  %v864_v61 = vadd.f32 %v787_v59, %v395_v57 }
  0xfb   : > { %v725_v62 = vpop.f32.mrf.mxu0  ;;  %v789_v63 = vpop.f32.mrf.mxu1 }
  0xfc   : > { %881 = vst.msk [vmem:[#allocation2 + $0x8] sm:$0xff] %vm313_vm0, %v848_v60  ;;  %897 = vst.msk [vmem:[#allocation2 + $0x88] sm:$0xff] %vm313_vm0, %v864_v61 }
  0xfd   : > { %v728_v3 = vpop.f32.mrf.mxu0  ;;  %v792_v4 = vpop.f32.mrf.mxu1 }
  0xfe   : > { %v849_v6 = vadd.f32 %v728_v3, %v380_v0  ;;  %v865_v7 = vadd.f32 %v792_v4, %v396_v1  ;;  %v384_v3 = vld [vmem:[#allocation2 + $0x30] sm:$0xff] }
  0xff   : > { %v915_v9 = vld [vmem:[#allocation2] sm:$0xff]  ;;  %v730_v11 = vpop.f32.mrf.mxu0  ;;  %v794_v12 = vpop.f32.mrf.mxu1  ;;  %v400_v4 = vld [vmem:[#allocation2 + $0xb0] sm:$0xff] }
 0x100   : > { %v931_v10 = vld [vmem:[#allocation2 + $0x80] sm:$0xff]  ;;  %v954_v14 = vmul.f32 %v1806_v2, %v915_v9  ;;  %882 = vst.msk [vmem:[#allocation2 + $0x10] sm:$0xff] %vm313_vm0, %v849_v6  ;;  %898 = vst.msk [vmem:[#allocation2 + $0x90] sm:$0xff] %vm313_vm0, %v865_v7 }
 0x101   : > { %v970_v15 = vmul.f32 %v1806_v2, %v931_v10  ;;  %v731_v16 = vpop.f32.mrf.mxu0  ;;  %v795_v17 = vpop.f32.mrf.mxu1 }
 0x102   : > { %v993_v18 = vadd.f32 %v1811_v5, %v954_v14  ;;  %v850_v20 = vadd.f32 %v731_v16, %v381_v8  ;;  %v866_v21 = vadd.f32 %v795_v17, %v397_v13  ;;  %v385_v16 = vld [vmem:[#allocation2 + $0x38] sm:$0xff] }
 0x103   : > { %v1009_v19 = vadd.f32 %v1811_v5, %v970_v15  ;;  %v916_v22 = vld [vmem:[#allocation2 + $0x8] sm:$0xff]  ;;  %v733_v24 = vpop.f32.mrf.mxu0  ;;  %v797_v25 = vpop.f32.mrf.mxu1  ;;  %v401_v17 = vld [vmem:[#allocation2 + $0xb8] sm:$0xff] }
 0x104   : > { %v932_v23 = vld [vmem:[#allocation2 + $0x88] sm:$0xff]  ;;  %v1025_v26 = vmax.f32 %v993_v18, 0.0  ;;  %v955_v28 = vmul.f32 %v1806_v2, %v916_v22  ;;  %883 = vst.msk [vmem:[#allocation2 + $0x18] sm:$0xff] %vm313_vm0, %v850_v20  ;;  %899 = vst.msk [vmem:[#allocation2 + $0x98] sm:$0xff] %vm313_vm0, %v866_v21 }
 0x105   : > { %v1041_v27 = vmax.f32 %v1009_v19, 0.0  ;;  %v971_v29 = vmul.f32 %v1806_v2, %v932_v23  ;;  %v736_v32 = vpop.f32.mrf.mxu0  ;;  %v800_v33 = vpop.f32.mrf.mxu1 }
 0x106   : > { %v1452_v34 = vpack.c.bf16 %v1025_v26, %v1025_v26  ;;  %v994_v36 = vadd.f32 %v1811_v5, %v955_v28  ;;  %v851_v40 = vadd.f32 %v736_v32, %v382_v30  ;;  %v867_v41 = vadd.f32 %v800_v33, %v398_v31 }
 0x107   : > { %v1468_v35 = vpack.c.bf16 %v1041_v27, %v1041_v27  ;;  %v1010_v37 = vadd.f32 %v1811_v5, %v971_v29  ;;  %v917_v38 = vld [vmem:[#allocation2 + $0x10] sm:$0xff]  ;;  %v738_v42 = vpop.f32.mrf.mxu0  ;;  %v802_v43 = vpop.f32.mrf.mxu1 }
 0x108   : > { %v933_v39 = vld [vmem:[#allocation2 + $0x90] sm:$0xff]  ;;  %1186 = vst.msk [vmem:[%s1827_s28] sm:$0xf] %vm1185_vm4, %v1452_v34  ;;  %v1026_v44 = vmax.f32 %v994_v36, 0.0  ;;  %v956_v46 = vmul.f32 %v1806_v2, %v917_v38  ;;  %v386_v34 = vld [vmem:[#allocation2 + $0x40] sm:$0xff] }
 0x109   : > { %1202 = vst.msk [vmem:[%s1827_s28 + $0x40] sm:$0xf] %vm1185_vm4, %v1468_v35  ;;  %v1042_v45 = vmax.f32 %v1010_v37, 0.0  ;;  %v972_v47 = vmul.f32 %v1806_v2, %v933_v39  ;;  %v739_v50 = vpop.f32.mrf.mxu0  ;;  %v803_v51 = vpop.f32.mrf.mxu1  ;;  %v402_v35 = vld [vmem:[#allocation2 + $0xc0] sm:$0xff] }
 0x10a   : > { %884 = vst.msk [vmem:[#allocation2 + $0x20] sm:$0xff] %vm313_vm0, %v851_v40  ;;  %900 = vst.msk [vmem:[#allocation2 + $0xa0] sm:$0xff] %vm313_vm0, %v867_v41  ;;  %v1453_v52 = vpack.c.bf16 %v1026_v44, %v1026_v44  ;;  %v995_v54 = vadd.f32 %v1811_v5, %v956_v46  ;;  %v852_v58 = vadd.f32 %v739_v50, %v383_v48 }
 0x10b   : > { %v1469_v53 = vpack.c.bf16 %v1042_v45, %v1042_v45  ;;  %v1011_v55 = vadd.f32 %v1811_v5, %v972_v47  ;;  %v918_v56 = vld [vmem:[#allocation2 + $0x18] sm:$0xff]  ;;  %v868_v59 = vadd.f32 %v803_v51, %v399_v49  ;;  %v741_v60 = vpop.f32.mrf.mxu0  ;;  %v805_v61 = vpop.f32.mrf.mxu1 }
 0x10c   : > { %v934_v57 = vld [vmem:[#allocation2 + $0x98] sm:$0xff]  ;;  %1187 = vst.msk [vmem:[%s1827_s28 + $0x4] sm:$0xf] %vm1185_vm4, %v1453_v52  ;;  %v1027_v62 = vmax.f32 %v995_v54, 0.0  ;;  %v957_v0 = vmul.f32 %v1806_v2, %v918_v56  ;;  %v387_v52 = vld [vmem:[#allocation2 + $0x48] sm:$0xff] }
 0x10d   : > { %1203 = vst.msk [vmem:[%s1827_s28 + $0x44] sm:$0xf] %vm1185_vm4, %v1469_v53  ;;  %v1043_v63 = vmax.f32 %v1011_v55, 0.0  ;;  %v973_v1 = vmul.f32 %v1806_v2, %v934_v57  ;;  %v744_v6 = vpop.f32.mrf.mxu0  ;;  %v808_v7 = vpop.f32.mrf.mxu1  ;;  %v403_v53 = vld [vmem:[#allocation2 + $0xc8] sm:$0xff] }
 0x10e   : > { %885 = vst.msk [vmem:[#allocation2 + $0x28] sm:$0xff] %vm313_vm0, %v852_v58  ;;  %901 = vst.msk [vmem:[#allocation2 + $0xa8] sm:$0xff] %vm313_vm0, %v868_v59  ;;  %v1454_v8 = vpack.c.bf16 %v1027_v62, %v1027_v62  ;;  %v996_v10 = vadd.f32 %v1811_v5, %v957_v0  ;;  %v853_v12 = vadd.f32 %v744_v6, %v384_v3  ;;  %v388_v0 = vld [vmem:[#allocation2 + $0x50] sm:$0xff] }
 0x10f   : > { %v1470_v9 = vpack.c.bf16 %v1043_v63, %v1043_v63  ;;  %v1012_v11 = vadd.f32 %v1811_v5, %v973_v1  ;;  %v869_v13 = vadd.f32 %v808_v7, %v400_v4  ;;  %v746_v14 = vpop.f32.mrf.mxu0  ;;  %v810_v15 = vpop.f32.mrf.mxu1 }
 0x110   : > { %1188 = vst.msk [vmem:[%s1827_s28 + $0x8] sm:$0xf] %vm1185_vm4, %v1454_v8  ;;  %v1028_v18 = vmax.f32 %v996_v10, 0.0 }
 0x111   : > { %1204 = vst.msk [vmem:[%s1827_s28 + $0x48] sm:$0xf] %vm1185_vm4, %v1470_v9  ;;  %v1044_v19 = vmax.f32 %v1012_v11, 0.0  ;;  %v919_v20 = vld [vmem:[#allocation2 + $0x20] sm:$0xff]  ;;  %v747_v24 = vpop.f32.mrf.mxu0  ;;  %v811_v25 = vpop.f32.mrf.mxu1  ;;  %v404_v11 = vld [vmem:[#allocation2 + $0xd0] sm:$0xff] }
 0x112   : > { %v935_v21 = vld [vmem:[#allocation2 + $0xa0] sm:$0xff]  ;;  %v958_v22 = vmul.f32 %v1806_v2, %v919_v20  ;;  %886 = vst.msk [vmem:[#allocation2 + $0x30] sm:$0xff] %vm313_vm0, %v853_v12  ;;  %902 = vst.msk [vmem:[#allocation2 + $0xb0] sm:$0xff] %vm313_vm0, %v869_v13  ;;  %v1455_v26 = vpack.c.bf16 %v1028_v18, %v1028_v18  ;;  %v854_v28 = vadd.f32 %v747_v24, %v385_v16 }
 0x113   : > { %v974_v23 = vmul.f32 %v1806_v2, %v935_v21  ;;  %v1471_v27 = vpack.c.bf16 %v1044_v19, %v1044_v19  ;;  %v870_v29 = vadd.f32 %v811_v25, %v401_v17  ;;  %v749_v32 = vpop.f32.mrf.mxu0  ;;  %v813_v33 = vpop.f32.mrf.mxu1 }
 0x114   : > { %v997_v30 = vadd.f32 %v1811_v5, %v958_v22  ;;  %1189 = vst.msk [vmem:[%s1827_s28 + $0xc] sm:$0xf] %vm1185_vm4, %v1455_v26  ;;  %v389_v32 = vld [vmem:[#allocation2 + $0x58] sm:$0xff] }
 0x115   : > { %v1013_v31 = vadd.f32 %v1811_v5, %v974_v23  ;;  %1205 = vst.msk [vmem:[%s1827_s28 + $0x4c] sm:$0xf] %vm1185_vm4, %v1471_v27  ;;  %v920_v36 = vld [vmem:[#allocation2 + $0x28] sm:$0xff]  ;;  %v752_v42 = vpop.f32.mrf.mxu0  ;;  %v816_v43 = vpop.f32.mrf.mxu1  ;;  %v405_v33 = vld [vmem:[#allocation2 + $0xd8] sm:$0xff] }
 0x116   : > { %v936_v37 = vld [vmem:[#allocation2 + $0xa8] sm:$0xff]  ;;  %887 = vst.msk [vmem:[#allocation2 + $0x38] sm:$0xff] %vm313_vm0, %v854_v28  ;;  %903 = vst.msk [vmem:[#allocation2 + $0xb8] sm:$0xff] %vm313_vm0, %v870_v29  ;;  %v1029_v38 = vmax.f32 %v997_v30, 0.0  ;;  %v959_v40 = vmul.f32 %v1806_v2, %v920_v36  ;;  %v855_v44 = vadd.f32 %v752_v42, %v386_v34  ;;  %v871_v45 = vadd.f32 %v816_v43, %v402_v35 }
 0x117   : > { %v1045_v39 = vmax.f32 %v1013_v31, 0.0  ;;  %v975_v41 = vmul.f32 %v1806_v2, %v936_v37  ;;  %v754_v50 = vpop.f32.mrf.mxu0  ;;  %v818_v51 = vpop.f32.mrf.mxu1 }
 0x118   : > { %v1456_v46 = vpack.c.bf16 %v1029_v38, %v1029_v38  ;;  %v998_v48 = vadd.f32 %v1811_v5, %v959_v40  ;;  %888 = vst.msk [vmem:[#allocation2 + $0x40] sm:$0xff] %vm313_vm0, %v855_v44  ;;  %904 = vst.msk [vmem:[#allocation2 + $0xc0] sm:$0xff] %vm313_vm0, %v871_v45  ;;  %v390_v50 = vld [vmem:[#allocation2 + $0x60] sm:$0xff] }
 0x119   : > { %v1472_v47 = vpack.c.bf16 %v1045_v39, %v1045_v39  ;;  %v1014_v49 = vadd.f32 %v1811_v5, %v975_v41  ;;  %v921_v54 = vld [vmem:[#allocation2 + $0x30] sm:$0xff]  ;;  %v755_v60 = vpop.f32.mrf.mxu0  ;;  %v819_v61 = vpop.f32.mrf.mxu1  ;;  %v406_v51 = vld [vmem:[#allocation2 + $0xe0] sm:$0xff] }
 0x11a   : > { %v937_v55 = vld [vmem:[#allocation2 + $0xb0] sm:$0xff]  ;;  %1190 = vst.msk [vmem:[%s1827_s28 + $0x10] sm:$0xf] %vm1185_vm4, %v1456_v46  ;;  %v1030_v56 = vmax.f32 %v998_v48, 0.0  ;;  %v960_v58 = vmul.f32 %v1806_v2, %v921_v54  ;;  %v856_v62 = vadd.f32 %v755_v60, %v387_v52  ;;  %v872_v63 = vadd.f32 %v819_v61, %v403_v53 }
 0x11b   : > { %1206 = vst.msk [vmem:[%s1827_s28 + $0x50] sm:$0xf] %vm1185_vm4, %v1472_v47  ;;  %v1046_v57 = vmax.f32 %v1014_v49, 0.0  ;;  %v976_v59 = vmul.f32 %v1806_v2, %v937_v55  ;;  %v757_v9 = vpop.f32.mrf.mxu0  ;;  %v821_v10 = vpop.f32.mrf.mxu1 }
 0x11c   : > { %v1457_v1 = vpack.c.bf16 %v1030_v56, %v1030_v56  ;;  %v999_v4 = vadd.f32 %v1811_v5, %v960_v58  ;;  %889 = vst.msk [vmem:[#allocation2 + $0x48] sm:$0xff] %vm313_vm0, %v856_v62  ;;  %905 = vst.msk [vmem:[#allocation2 + $0xc8] sm:$0xff] %vm313_vm0, %v872_v63 }
 0x11d   : > { %v1473_v3 = vpack.c.bf16 %v1046_v57, %v1046_v57  ;;  %v1015_v6 = vadd.f32 %v1811_v5, %v976_v59  ;;  %v922_v7 = vld [vmem:[#allocation2 + $0x38] sm:$0xff]  ;;  %v760_v16 = vpop.f32.mrf.mxu0  ;;  %v824_v17 = vpop.f32.mrf.mxu1 }
 0x11e   : > { %v938_v8 = vld [vmem:[#allocation2 + $0xb8] sm:$0xff]  ;;  %v961_v12 = vmul.f32 %v1806_v2, %v922_v7  ;;  %1191 = vst.msk [vmem:[%s1827_s28 + $0x14] sm:$0xf] %vm1185_vm4, %v1457_v1  ;;  %v1031_v14 = vmax.f32 %v999_v4, 0.0  ;;  %v857_v20 = vadd.f32 %v760_v16, %v388_v0  ;;  %v873_v21 = vadd.f32 %v824_v17, %v404_v11  ;;  %v407_v7 = vld [vmem:[#allocation2 + $0xe8] sm:$0xff] }
 0x11f   : > { %v977_v13 = vmul.f32 %v1806_v2, %v938_v8  ;;  %1207 = vst.msk [vmem:[%s1827_s28 + $0x54] sm:$0xf] %vm1185_vm4, %v1473_v3  ;;  %v1047_v15 = vmax.f32 %v1015_v6, 0.0  ;;  %v923_v24 = vld [vmem:[#allocation2 + $0x40] sm:$0xff]  ;;  %v762_v26 = vpop.f32.mrf.mxu0  ;;  %v826_v27 = vpop.f32.mrf.mxu1  ;;  %v391_v6 = vld [vmem:[#allocation2 + $0x68] sm:$0xff] }
 0x120   : > { %v1000_v18 = vadd.f32 %v1811_v5, %v961_v12  ;;  %v1458_v22 = vpack.c.bf16 %v1031_v14, %v1031_v14  ;;  %v939_v25 = vld [vmem:[#allocation2 + $0xc0] sm:$0xff]  ;;  %v962_v30 = vmul.f32 %v1806_v2, %v923_v24  ;;  %890 = vst.msk [vmem:[#allocation2 + $0x50] sm:$0xff] %vm313_vm0, %v857_v20  ;;  %906 = vst.msk [vmem:[#allocation2 + $0xd0] sm:$0xff] %vm313_vm0, %v873_v21 }
 0x121   : > { %v1016_v19 = vadd.f32 %v1811_v5, %v977_v13  ;;  %v1474_v23 = vpack.c.bf16 %v1047_v15, %v1047_v15  ;;  %v978_v31 = vmul.f32 %v1806_v2, %v939_v25  ;;  %v763_v34 = vpop.f32.mrf.mxu0  ;;  %v827_v35 = vpop.f32.mrf.mxu1 }
 0x122   : > { %v1032_v28 = vmax.f32 %v1000_v18, 0.0  ;;  %1192 = vst.msk [vmem:[%s1827_s28 + $0x18] sm:$0xf] %vm1185_vm4, %v1458_v22  ;;  %v1001_v38 = vadd.f32 %v1811_v5, %v962_v30  ;;  %v858_v42 = vadd.f32 %v763_v34, %v389_v32  ;;  %v874_v43 = vadd.f32 %v827_v35, %v405_v33  ;;  %v392_v18 = vld [vmem:[#allocation2 + $0x70] sm:$0xff] }
 0x123   : > { %v1048_v29 = vmax.f32 %v1016_v19, 0.0  ;;  %1208 = vst.msk [vmem:[%s1827_s28 + $0x58] sm:$0xf] %vm1185_vm4, %v1474_v23  ;;  %v1017_v39 = vadd.f32 %v1811_v5, %v978_v31  ;;  %v924_v40 = vld [vmem:[#allocation2 + $0x48] sm:$0xff]  ;;  %v765_v44 = vpop.f32.mrf.mxu0  ;;  %v829_v45 = vpop.f32.mrf.mxu1  ;;  %v408_v19 = vld [vmem:[#allocation2 + $0xf0] sm:$0xff] }
 0x124   : > { %v1459_v36 = vpack.c.bf16 %v1032_v28, %v1032_v28  ;;  %v940_v41 = vld [vmem:[#allocation2 + $0xc8] sm:$0xff]  ;;  %v1033_v46 = vmax.f32 %v1001_v38, 0.0  ;;  %v963_v48 = vmul.f32 %v1806_v2, %v924_v40  ;;  %891 = vst.msk [vmem:[#allocation2 + $0x58] sm:$0xff] %vm313_vm0, %v858_v42  ;;  %907 = vst.msk [vmem:[#allocation2 + $0xd8] sm:$0xff] %vm313_vm0, %v874_v43 }
 0x125   : > { %v1475_v37 = vpack.c.bf16 %v1048_v29, %v1048_v29  ;;  %v1049_v47 = vmax.f32 %v1017_v39, 0.0  ;;  %v979_v49 = vmul.f32 %v1806_v2, %v940_v41  ;;  %v768_v52 = vpop.f32.mrf.mxu0  ;;  %v832_v53 = vpop.f32.mrf.mxu1 }
 0x126   : > { %1193 = vst.msk [vmem:[%s1827_s28 + $0x1c] sm:$0xf] %vm1185_vm4, %v1459_v36  ;;  %v1460_v54 = vpack.c.bf16 %v1033_v46, %v1033_v46  ;;  %v1002_v56 = vadd.f32 %v1811_v5, %v963_v48  ;;  %v859_v60 = vadd.f32 %v768_v52, %v390_v50  ;;  %v875_v61 = vadd.f32 %v832_v53, %v406_v51  ;;  %v393_v36 = vld [vmem:[#allocation2 + $0x78] sm:$0xff] }
 0x127   : > { %1209 = vst.msk [vmem:[%s1827_s28 + $0x5c] sm:$0xf] %vm1185_vm4, %v1475_v37  ;;  %v1476_v55 = vpack.c.bf16 %v1049_v47, %v1049_v47  ;;  %v1018_v57 = vadd.f32 %v1811_v5, %v979_v49  ;;  %v925_v58 = vld [vmem:[#allocation2 + $0x50] sm:$0xff]  ;;  %v770_v62 = vpop.f32.mrf.mxu0  ;;  %v834_v63 = vpop.f32.mrf.mxu1  ;;  %v409_v37 = vld [vmem:[#allocation2 + $0xf8] sm:$0xff] }
 0x128   : > { %v941_v59 = vld [vmem:[#allocation2 + $0xd0] sm:$0xff]  ;;  %1194 = vst.msk [vmem:[%s1827_s28 + $0x20] sm:$0xf] %vm1185_vm4, %v1460_v54  ;;  %v1034_v0 = vmax.f32 %v1002_v56, 0.0  ;;  %v964_v3 = vmul.f32 %v1806_v2, %v925_v58 }
 0x129   : > { %1210 = vst.msk [vmem:[%s1827_s28 + $0x60] sm:$0xf] %vm1185_vm4, %v1476_v55  ;;  %v1050_v1 = vmax.f32 %v1018_v57, 0.0  ;;  %v980_v4 = vmul.f32 %v1806_v2, %v941_v59  ;;  %v771_v8 = vpop.f32.mrf.mxu0  ;;  %v835_v9 = vpop.f32.mrf.mxu1 }
 0x12a   : > { %892 = vst.msk [vmem:[#allocation2 + $0x60] sm:$0xff] %vm313_vm0, %v859_v60  ;;  %908 = vst.msk [vmem:[#allocation2 + $0xe0] sm:$0xff] %vm313_vm0, %v875_v61  ;;  %v1461_v10 = vpack.c.bf16 %v1034_v0, %v1034_v0  ;;  %v1003_v12 = vadd.f32 %v1811_v5, %v964_v3  ;;  %v860_v14 = vadd.f32 %v771_v8, %v391_v6 }
 0x12b   : > { %v1477_v11 = vpack.c.bf16 %v1050_v1, %v1050_v1  ;;  %v1019_v13 = vadd.f32 %v1811_v5, %v980_v4  ;;  %v876_v15 = vadd.f32 %v835_v9, %v407_v7  ;;  %v773_v16 = vpop.f32.mrf.mxu0  ;;  %v837_v17 = vpop.f32.mrf.mxu1  ;;  %v926_v22 = vld [vmem:[#allocation2 + $0x58] sm:$0xff] }
 0x12c   : > { %1195 = vst.msk [vmem:[%s1827_s28 + $0x24] sm:$0xf] %vm1185_vm4, %v1461_v10  ;;  %v1035_v20 = vmax.f32 %v1003_v12, 0.0  ;;  %v942_v23 = vld [vmem:[#allocation2 + $0xd8] sm:$0xff]  ;;  %v965_v24 = vmul.f32 %v1806_v2, %v926_v22 }
 0x12d   : > { %1211 = vst.msk [vmem:[%s1827_s28 + $0x64] sm:$0xf] %vm1185_vm4, %v1477_v11  ;;  %v1051_v21 = vmax.f32 %v1019_v13, 0.0  ;;  %v981_v25 = vmul.f32 %v1806_v2, %v942_v23  ;;  %v776_v26 = vpop.f32.mrf.mxu0  ;;  %v840_v27 = vpop.f32.mrf.mxu1 }
 0x12e   : > { %893 = vst.msk [vmem:[#allocation2 + $0x68] sm:$0xff] %vm313_vm0, %v860_v14  ;;  %909 = vst.msk [vmem:[#allocation2 + $0xe8] sm:$0xff] %vm313_vm0, %v876_v15  ;;  %v1462_v28 = vpack.c.bf16 %v1035_v20, %v1035_v20  ;;  %v861_v30 = vadd.f32 %v776_v26, %v392_v18  ;;  %v877_v31 = vadd.f32 %v840_v27, %v408_v19 }
 0x12f   : > { %v1478_v29 = vpack.c.bf16 %v1051_v21, %v1051_v21  ;;  %v1004_v32 = vadd.f32 %v1811_v5, %v965_v24  ;;  %v1020_v33 = vadd.f32 %v1811_v5, %v981_v25  ;;  %v778_v34 = vpop.f32.mrf.mxu0  ;;  %v842_v35 = vpop.f32.mrf.mxu1 }
 0x130   : > { %1196 = vst.msk [vmem:[%s1827_s28 + $0x28] sm:$0xf] %vm1185_vm4, %v1462_v28 }
 0x131   : > { %1212 = vst.msk [vmem:[%s1827_s28 + $0x68] sm:$0xf] %vm1185_vm4, %v1478_v29  ;;  %v927_v38 = vld [vmem:[#allocation2 + $0x60] sm:$0xff]  ;;  %v1036_v40 = vmax.f32 %v1004_v32, 0.0  ;;  %v1052_v41 = vmax.f32 %v1020_v33, 0.0  ;;  %v779_v44 = vpop.f32.mrf.mxu0  ;;  %v843_v45 = vpop.f32.mrf.mxu1 }
 0x132   : > { %v943_v39 = vld [vmem:[#allocation2 + $0xe0] sm:$0xff]  ;;  %894 = vst.msk [vmem:[#allocation2 + $0x70] sm:$0xff] %vm313_vm0, %v861_v30  ;;  %910 = vst.msk [vmem:[#allocation2 + $0xf0] sm:$0xff] %vm313_vm0, %v877_v31  ;;  %v966_v42 = vmul.f32 %v1806_v2, %v927_v38  ;;  %v862_v46 = vadd.f32 %v779_v44, %v393_v36  ;;  %v878_v47 = vadd.f32 %v843_v45, %v409_v37 }
 0x133   : > { %v982_v43 = vmul.f32 %v1806_v2, %v943_v39  ;;  %v1463_v48 = vpack.c.bf16 %v1036_v40, %v1036_v40  ;;  %v1479_v49 = vpack.c.bf16 %v1052_v41, %v1052_v41  ;;  %v781_v52 = vpop.f32.mrf.mxu0  ;;  %v845_v53 = vpop.f32.mrf.mxu1 }
 0x134   : > { %v1005_v50 = vadd.f32 %v1811_v5, %v966_v42  ;;  %895 = vst.msk [vmem:[#allocation2 + $0x78] sm:$0xff] %vm313_vm0, %v862_v46  ;;  %911 = vst.msk [vmem:[#allocation2 + $0xf8] sm:$0xff] %vm313_vm0, %v878_v47 }
 0x135   : > { %v1021_v51 = vadd.f32 %v1811_v5, %v982_v43  ;;  %v928_v54 = vld [vmem:[#allocation2 + $0x68] sm:$0xff]  ;;  %1197 = vst.msk [vmem:[%s1827_s28 + $0x2c] sm:$0xf] %vm1185_vm4, %v1463_v48  ;;  %1213 = vst.msk [vmem:[%s1827_s28 + $0x6c] sm:$0xf] %vm1185_vm4, %v1479_v49 }
 0x136   : > { %v944_v55 = vld [vmem:[#allocation2 + $0xe8] sm:$0xff]  ;;  %v1037_v56 = vmax.f32 %v1005_v50, 0.0  ;;  %v967_v58 = vmul.f32 %v1806_v2, %v928_v54 }
 0x137   : > { %v1053_v57 = vmax.f32 %v1021_v51, 0.0  ;;  %v983_v59 = vmul.f32 %v1806_v2, %v944_v55 }
 0x138   : > { %v1464_v60 = vpack.c.bf16 %v1037_v56, %v1037_v56  ;;  %v1006_v62 = vadd.f32 %v1811_v5, %v967_v58 }
 0x139   : > { %v1480_v61 = vpack.c.bf16 %v1053_v57, %v1053_v57  ;;  %v1022_v63 = vadd.f32 %v1811_v5, %v983_v59  ;;  %v929_v0 = vld [vmem:[#allocation2 + $0x70] sm:$0xff] }
 0x13a   : > { %v945_v1 = vld [vmem:[#allocation2 + $0xf0] sm:$0xff]  ;;  %v968_v3 = vmul.f32 %v1806_v2, %v929_v0  ;;  %1198 = vst.msk [vmem:[%s1827_s28 + $0x30] sm:$0xf] %vm1185_vm4, %v1464_v60  ;;  %v1038_v6 = vmax.f32 %v1006_v62, 0.0 }
 0x13b   : > { %v984_v4 = vmul.f32 %v1806_v2, %v945_v1  ;;  %1214 = vst.msk [vmem:[%s1827_s28 + $0x70] sm:$0xf] %vm1185_vm4, %v1480_v61  ;;  %v1054_v7 = vmax.f32 %v1022_v63, 0.0  ;;  %v930_v12 = vld [vmem:[#allocation2 + $0x78] sm:$0xff] }
 0x13c   : > { %v1007_v8 = vadd.f32 %v1811_v5, %v968_v3  ;;  %v1465_v10 = vpack.c.bf16 %v1038_v6, %v1038_v6  ;;  %v946_v13 = vld [vmem:[#allocation2 + $0xf8] sm:$0xff]  ;;  %v969_v16 = vmul.f32 %v1806_v2, %v930_v12 }
 0x13d   : > { %v1023_v9 = vadd.f32 %v1811_v5, %v984_v4  ;;  %v1481_v11 = vpack.c.bf16 %v1054_v7, %v1054_v7  ;;  %v985_v17 = vmul.f32 %v1806_v2, %v946_v13 }
 0x13e   : > { %v1039_v14 = vmax.f32 %v1007_v8, 0.0  ;;  %1199 = vst.msk [vmem:[%s1827_s28 + $0x34] sm:$0xf] %vm1185_vm4, %v1465_v10  ;;  %v1008_v20 = vadd.f32 %v1811_v5, %v969_v16 }
 0x13f   : > { %v1055_v15 = vmax.f32 %v1023_v9, 0.0  ;;  %1215 = vst.msk [vmem:[%s1827_s28 + $0x74] sm:$0xf] %vm1185_vm4, %v1481_v11  ;;  %v1024_v21 = vadd.f32 %v1811_v5, %v985_v17 }
 0x140   : > { %v1466_v18 = vpack.c.bf16 %v1039_v14, %v1039_v14  ;;  %v1040_v22 = vmax.f32 %v1008_v20, 0.0 }
 0x141   : > { %v1482_v19 = vpack.c.bf16 %v1055_v15, %v1055_v15  ;;  %v1056_v23 = vmax.f32 %v1024_v21, 0.0 }
 0x142   : > { %1200 = vst.msk [vmem:[%s1827_s28 + $0x38] sm:$0xf] %vm1185_vm4, %v1466_v18  ;;  %v1467_v24 = vpack.c.bf16 %v1040_v22, %v1040_v22 }
 0x143   : > { %1216 = vst.msk [vmem:[%s1827_s28 + $0x78] sm:$0xf] %vm1185_vm4, %v1482_v19  ;;  %v1483_v25 = vpack.c.bf16 %v1056_v23, %v1056_v23 }
 0x144   : > { %1201 = vst.msk [vmem:[%s1827_s28 + $0x3c] sm:$0xf] %vm1185_vm4, %v1467_v24 }
 0x145   : > { %1217 = vst.msk [vmem:[%s1827_s28 + $0x7c] sm:$0xf] %vm1185_vm4, %v1483_v25 }
 0x146 PF: > { %s14_s17 = sadd.s32 1, %s1611_s17   ;;  %s1989_s15 = smov %s1607_s16 }
 0x147   : > { %p11_p5 = scmp.ge.s32.totalorder %s14_s17, 4   ;;  %s1990_s16 = smov %s1992_s18 }
 0x149   :  { %13 = sbr.rel (!%p11_p5) target bundleno = 2 (0x2), region = 83 }

</bundles_post_ra>
